<compile_context>
chip_gen: v6e
topology: v6e:2x2x1
jax: 0.10.0
libtpu: 0.0.40
codegen_flags: <defaults>
</compile_context>

<pallas_src>
import math

import jax
import jax.numpy as jnp
from jax.experimental import pallas as pl
from jax.experimental.pallas import tpu as pltpu


# ----------------------------------------------------------------------------
# Pallas copy kernel (only used when an explicit HBM->VMEM->HBM copy is asked
# for; the default squeeze path never touches it).
# ----------------------------------------------------------------------------
def _copy_tile_kernel(x_ref, o_ref):
    # Straight tile copy; the squeeze/reshape happened (for free) in the
    # wrapper's metadata-only reshapes around the kernel.
    o_ref[...] = x_ref[...]


_TARGET_BLOCK_BYTES = 4 << 20   # ~4 MiB/block -> <=16 MiB in flight (2 in + 2 out bufs)
_MAX_LANES = 2048               # lane-dense sweet spot per review (512-2048 per side)


def _plan_2d_tiles(total, itemsize, target_block_bytes=_TARGET_BLOCK_BYTES):
    """Pick a lane-dense 2-D view (M, N) and a row tile size for a copy kernel.

    Returns (M, N, tile_m) or None if no multiple-of-128 factorization exists.
    """
    if total % 128 != 0:
        return None

    # Lane width: multiple of 128 dividing the element count, capped so an
    # 8-row block still fits the byte budget and lanes stay <= _MAX_LANES.
    n = 128
    while (total % (n * 2) == 0
           and n * 2 <= _MAX_LANES
           and (n * 2) * 8 * itemsize <= target_block_bytes):
        n *= 2

    m = total // n
    max_rows = max(1, target_block_bytes // (n * itemsize))

    if m <= max_rows:
        # Whole row extent fits in one block ("full dim" satisfies the (8,128)
        # block-shape rule even if m is not a multiple of 8).
        return m, n, m

    # Otherwise pick the largest multiple-of-8 divisor of m within budget.
    cand = (max_rows // 8) * 8
    while cand >= 8:
        if m % cand == 0:
            return m, n, cand
        cand -= 8
    return None


def _squeeze_via_pallas_copy(x, out_shape):
    """Explicit streaming copy that realizes the squeezed tensor via Pallas."""
    total = math.prod(x.shape)
    plan = _plan_2d_tiles(total, x.dtype.itemsize)
    if plan is None:
        # TODO(synk): element count has no multiple-of-128 lane-dense 2-D view;
        # squeeze is pure metadata anyway, so fall back to the zero-copy reshape.
        return jnp.reshape(x, out_shape)

    m, n, tile_m = plan
    x2d = jnp.reshape(x, (m, n))          # metadata-only on contiguous data

    y2d = pl.pallas_call(
        _copy_tile_kernel,
        out_shape=jax.ShapeDtypeStruct((m, n), x.dtype),
        grid=(m // tile_m,),
        in_specs=[pl.BlockSpec((tile_m, n), lambda i: (i, 0))],
        out_specs=pl.BlockSpec((tile_m, n), lambda i: (i, 0)),
        compiler_params=pltpu.CompilerParams(
            # Independent row slabs -> shard across v7x's 2 TensorCores.
            dimension_semantics=("parallel",),
            # Raise the scoped-VMEM default (16/32 MiB) but stay well under
            # v7x's 64 MiB physical VMEM.
            vmem_limit_bytes=48 << 20,
        ),
    )(x2d)

    return jnp.reshape(y2d, out_shape)    # metadata-only


# ----------------------------------------------------------------------------
# Squeeze semantics (torch.Tensor.squeeze)
# ----------------------------------------------------------------------------
def _squeeze_axes(shape, dim):
    ndim = len(shape)
    if dim is None:
        return tuple(i for i, s in enumerate(shape) if s == 1)
    d = dim % ndim                         # supports negative dims like torch
    return (d,) if shape[d] == 1 else ()   # non-singleton dim -> no-op


def squeeze_pallas(x, dim=None, use_pallas_copy=False):
    """JAX/Pallas implementation of x.squeeze(dim).

    Default path is zero-copy (pure metadata), matching the perf review's top
    recommendation.  `use_pallas_copy=True` routes through the optimized
    lane-dense Pallas streaming-copy kernel instead.
    """
    axes = _squeeze_axes(x.shape, dim)
    if not axes:
        return x
    out_shape = tuple(s for i, s in enumerate(x.shape) if i not in axes)

    if not use_pallas_copy:
        # Pure metadata op: no HBM traffic, no kernel launch.
        return jax.lax.squeeze(x, axes)

    return _squeeze_via_pallas_copy(x, out_shape)


class Squeeze:
    """JAX/Pallas counterpart of the PyTorch `Squeeze` module."""

    def __init__(self, dim=None, use_pallas_copy=False):
        self.dim = dim
        self.use_pallas_copy = use_pallas_copy

    def __call__(self, x):
        return squeeze_pallas(x, dim=self.dim, use_pallas_copy=self.use_pallas_copy)


# ----------------------------------------------------------------------------
# Self-test
# ----------------------------------------------------------------------------
if __name__ == "__main__":
    key = jax.random.PRNGKey(0)

    # (B, C=1, H, W) input — typical "squeeze the channel dim" use.
    x = jax.random.normal(key, (2, 1, 16, 16), dtype=jnp.float32)

    # 1) Pallas copy kernel path, dim=1 (lane-dense (1, 512) slab copy).
    y = jax.block_until_ready(Squeeze(dim=1, use_pallas_copy=True)(x))
    assert y.shape == (2, 16, 16), y.shape
    assert y.dtype == x.dtype
    assert jnp.array_equal(y, jnp.squeeze(x, axis=1))

    # 2) Pallas copy kernel path, dim=None (removes every size-1 axis).
    y2 = jax.block_until_ready(Squeeze(dim=None, use_pallas_copy=True)(x))
    assert y2.shape == (2, 16, 16), y2.shape
    assert jnp.array_equal(y2, jnp.squeeze(x))

    # 3) Negative dim through the Pallas copy path.
    y3 = jax.block_until_ready(Squeeze(dim=-3, use_pallas_copy=True)(x))
    assert y3.shape == (2, 16, 16), y3.shape
    assert jnp.array_equal(y3, jnp.squeeze(x, axis=1))

    # 4) Default (zero-copy metadata) path.
    y4 = jax.block_until_ready(Squeeze(dim=1)(x))
    assert y4.shape == (2, 16, 16), y4.shape
    assert jnp.array_equal(y4, jnp.squeeze(x, axis=1))

    # 5) dim pointing at a non-singleton axis: returns input unchanged.
    y5 = jax.block_until_ready(Squeeze(dim=0)(x))
    assert y5.shape == x.shape
    assert jnp.array_equal(y5, x)

    print("KERNEL_OK")
</pallas_src>

<mosaic_0001>
module attributes {stable_mosaic.version = 11 : i64} {
  func.func @_copy_tile_kernel(%arg0: i32, %arg1: memref<1x512xf32, #tpu.memory_space<vmem>>, %arg2: memref<1x512xf32, #tpu.memory_space<vmem>>) attributes {dimension_semantics = [#tpu.dimension_semantics<parallel>], iteration_bounds = array<i64: 1>, scalar_prefetch = 0 : i64, scratch_operands = 0 : i64, tpu.core_type = #tpu.core_type<tc>, window_params = [{transform_indices = @transform_0, window_bounds = array<i64: 1, 512>}, {transform_indices = @transform_1, window_bounds = array<i64: 1, 512>}]} {
    %c0 = arith.constant 0 : index
    %c0_0 = arith.constant 0 : index
    %0 = vector.load %arg1[%c0, %c0_0] : memref<1x512xf32, #tpu.memory_space<vmem>>, vector<1x512xf32>
    %c0_1 = arith.constant 0 : index
    %c0_2 = arith.constant 0 : index
    %1 = vector.load %arg2[%c0_1, %c0_2] : memref<1x512xf32, #tpu.memory_space<vmem>>, vector<1x512xf32>
    tpu.vector_store %arg2[%c0_1, %c0_2], %0 {strides = array<i32>} : memref<1x512xf32, #tpu.memory_space<vmem>>, vector<1x512xf32>,
    return
  }
  func.func @transform_0(%arg0: i32) -> (i32, i32) {
    %c0_i32 = arith.constant 0 : i32
    %c0_i32_0 = arith.constant 0 : i32
    return %arg0, %c0_i32 : i32, i32
  }
  func.func @transform_1(%arg0: i32) -> (i32, i32) {
    %c0_i32 = arith.constant 0 : i32
    %c0_i32_0 = arith.constant 0 : i32
    return %arg0, %c0_i32 : i32, i32
  }
}

</mosaic_0001>

<bundles_post_ra>
// kernel: tpu_custom_call.1
= control target key start
LH: loop header
LB: loop body
LE: loop exit
PB: predicated region body
PF: predicated region fallthrough
CT: control target
= control target key end

     0   :  { %6 = vsyncpa [#allocation3], 0  ;;  %s106_s0 = inlined_call_operand.hbm [shape: f32[1,512], index: 0, kind: input, shape index: {}]   ;;  %s107_s1 = inlined_call_operand.hbm [shape: f32[1,512], index: 1, kind: output, shape index: {}]  }
   0x1   :  { %7 = vsyncpa [#allocation4], 0  ;;  %s88_s6 = smov [#allocation2]  }
   0x2   :  { %s14_s7 = sshll.u32 %s88_s6, 4  ;;  %s15_s7 = int_to_ptr.vmem [resolvable:$true] %s14_s7 }
   0x3   :  { %s52_s8 = scalar_lea.vmem %s15_s7, 64  ;;  %p57_p1 = scmp.lt.s32.totalorder %s15_s7, %s15_s7 }
   0x4   :  { %p53_p0 = scmp.ne.s32.totalorder %s15_s7, %s52_s8  ;;  %p58_p2 = scmp.lt.s32.totalorder %s52_s8, %s52_s8 }
   0x6   :  { %p59_p3 = por %p58_p2, %p57_p1 }
   0x8   :  { %p60_p4 = pnand %p59_p3, %p53_p0 }
   0xa   :  { %63 = shalt.err (!%p60_p4)
}
   0xb   :  { %17 = dma.hbm_to_vmem [thread:$0]  %s106_s0, 64, %s15_s7, [#allocation3]  }
   0xc   :  { %84 = dma.done.wait [#allocation3], 64  }
   0xd   :  { %85 = vsyncadd [#allocation3], 4294967232  ;;  %v22_v0 = vlaneseq  ;;  %s89_s11 = smov [#allocation5]   ;;  %v21_v1 = vld [vmem:[#allocation2] sm:$0xf] }
   0xe   :  { %s33_s12 = sshll.u32 %s89_s11, 4  ;;  %s34_s12 = int_to_ptr.vmem [resolvable:$true] %s33_s12 }
   0xf   :  { %vm24_vm0 = vcmp.lt.s32.totalorder %v22_v0, 512  ;;  %s64_s13 = scalar_lea.vmem %s34_s12, 64  ;;  %p69_p6 = scmp.lt.s32.totalorder %s34_s12, %s34_s12 }
  0x10   :  { %26 = vst.msk [vmem:[#allocation5] sm:$0xf] %vm24_vm0, %v21_v1  ;;  %p65_p5 = scmp.ne.s32.totalorder %s34_s12, %s64_s13  ;;  %p70_p7 = scmp.lt.s32.totalorder %s64_s13, %s64_s13 }
  0x12   :  { %p71_p8 = por %p70_p7, %p69_p6 }
  0x14   :  { %p72_p9 = pnand %p71_p8, %p65_p5 }
  0x16   :  { %75 = shalt.err (!%p72_p9)
}
  0x17   :  { %36 = dma.vmem_to_hbm [thread:$0]  %s34_s12, 64, %s107_s1, [#allocation4]  }
  0x18   :  { %86 = dma.done.wait [#allocation4], 64  }
  0x19   :  { %87 = vsyncadd [#allocation4], 4294967232 }
  0x1a   :  { %40 = vsyncpa [#allocation3], 1 }
  0x1b   :  { %41 = vsyncpa [#allocation4], 1 }

</bundles_post_ra>
